<compile_context>
chip_gen: v7x
topology: tpu7x:2x2x1
jax: 0.10.0
libtpu: 0.0.40
codegen_flags: <defaults>
</compile_context>

<pallas_src>
import functools
import math

import jax
import jax.numpy as jnp
from jax import lax
from jax.experimental import pallas as pl
from jax.experimental.pallas import tpu as pltpu


def _round_up(x, m):
    return (x + m - 1) // m * m


# contract dim 0 of both operands (lhs^T @ rhs without an explicit transpose)
_TN = (((0,), (0,)), ((), ()))


def _mha_kernel(idx_ref, h_ref, e_ref,
                qw_ref, qb_ref, kw_ref, kb_ref, vw_ref, vb_ref,
                ew_ref, eb_ref, blk_ref,
                wv_out, za_out, cnt_out, e_out_ref,
                q_scr, k_scr, v_scr,
                *, num_heads, out_dim):
    f32 = jnp.float32
    bf16 = jnp.bfloat16
    step = pl.program_id(1)              # edge-tile index within this core's range
    n_nodes = h_ref.shape[0]
    te = e_ref.shape[0]                  # edge tile size
    hd = num_heads * out_dim
    inv_sqrt_d = 1.0 / math.sqrt(out_dim)

    # ---- first edge tile of this core: project node features once into bf16
    #      VMEM scratch and zero this core's partial accumulators (the
    #      accumulators ARE its resident output blocks). ----
    @pl.when(step == 0)
    def _init():
        h = h_ref[...].astype(f32)
        q_scr[...] = (jnp.dot(h, qw_ref[...], preferred_element_type=f32)
                      + qb_ref[...]).astype(bf16)
        # fold 1/sqrt(d) into K so the per-edge scale multiply disappears
        k_scr[...] = ((jnp.dot(h, kw_ref[...], preferred_element_type=f32)
                       + kb_ref[...]) * inv_sqrt_d).astype(bf16)
        v_scr[...] = (jnp.dot(h, vw_ref[...], preferred_element_type=f32)
                      + vb_ref[...]).astype(bf16)
        wv_out[...] = jnp.zeros_like(wv_out)
        za_out[...] = jnp.zeros_like(za_out)
        cnt_out[...] = jnp.zeros_like(cnt_out)

    # ---- edge-feature projection for this tile (tiny K, keep f32) ----
    p = jnp.dot(e_ref[...].astype(f32), ew_ref[...],
                preferred_element_type=f32) + eb_ref[...]              # [TE, HD]

    # ---- one-hot gather matrices in bf16 (0/1 exact).  Padded edges carry
    #      index == n_nodes which matches no node -> all-zero rows (inert). ----
    src = idx_ref[:, 0:1]                                              # [TE, 1]
    dst = idx_ref[:, 1:2]                                              # [TE, 1]
    node_ids = lax.broadcasted_iota(jnp.int32, (te, n_nodes), 1)
    oh_src = (node_ids == src).astype(bf16)                            # [TE, N]
    oh_dst = (node_ids == dst).astype(bf16)                            # [TE, N]

    # gather K_h[src]/sqrt(d), Q_h[dst], V_h[src]  (bf16 MXU, f32 accumulate)
    k_e = jnp.dot(oh_src, k_scr[...], preferred_element_type=f32)      # [TE, HD]
    q_e = jnp.dot(oh_dst, q_scr[...], preferred_element_type=f32)      # [TE, HD]
    v_e = jnp.dot(oh_src, v_scr[...], preferred_element_type=f32)      # [TE, HD]

    score = k_e * q_e + p                                              # [TE, HD]
    e_out_ref[...] = score.astype(e_out_ref.dtype)

    # per-head sum broadcast across the D lanes with ONE lane-dense
    # block-diagonal matmul (kept f32 for accuracy; tiny next to the one-hots)
    s_full = jnp.dot(score, blk_ref[...], preferred_element_type=f32)  # [TE, HD]
    a_full = jnp.exp(jnp.clip(s_full, -5.0, 5.0))                      # [TE, HD]
    v_msg = v_e * a_full                                               # [TE, HD]

    # ---- fused scatter-add to the SOURCE nodes: contract the edge axis of
    #      the source one-hot.  V-messages and attention weights share one
    #      2*HD-wide rhs so the scatter is a single lane-dense MXU pass. ----
    rhs = jnp.concatenate([v_msg, a_full], axis=1).astype(bf16)        # [TE, 2HD]
    scat = lax.dot_general(oh_src, rhs, dimension_numbers=_TN,
                           preferred_element_type=f32)                 # [N, 2HD]
    wv_out[...] += scat[:, :hd]
    za_out[...] += scat[:, hd:]
    cnt_out[...] += lax.dot_general(oh_src, jnp.ones((te, 8), bf16),
                                    dimension_numbers=_TN,
                                    preferred_element_type=f32)        # [N, 8]


def _vmem_bytes(n_nodes, in_node_dim, in_edge_dim, hd, te):
    """Rough per-core VMEM footprint estimate (lane/sublane padded)."""
    lane = lambda c: _round_up(max(int(c), 1), 128)
    sub = lambda r: _round_up(max(int(r), 1), 8)
    b = 0
    # resident / persistent buffers
    b += 3 * sub(n_nodes) * lane(hd) * 2            # q/k/v scratch (bf16)
    b += 2 * sub(n_nodes) * lane(hd) * 4            # wV / sum(a) partial blocks
    b += sub(n_nodes) * lane(8) * 4                 # count partial block
    b += sub(n_nodes) * lane(in_node_dim) * 4       # h block
    b += 3 * sub(in_node_dim) * lane(hd) * 4        # Wq / Wk / Wv
    b += sub(in_edge_dim) * lane(hd) * 4            # We
    b += 4 * sub(1) * lane(hd) * 4                  # biases
    b += lane(hd) * lane(hd) * 4                    # block-diagonal constant
    # double-buffered edge streams
    b += 2 * sub(te) * lane(2) * 4                  # edge indices
    b += 2 * sub(te) * lane(in_edge_dim) * 4        # edge features
    b += 2 * sub(te) * lane(hd) * 4                 # e_out tile
    # in-kernel temporaries
    b += 2 * sub(te) * lane(n_nodes) * 2            # one-hot src / dst (bf16)
    b += 10 * sub(te) * lane(hd) * 4                # p/k_e/q_e/v_e/score/a/...
    b += sub(te) * lane(2 * hd) * 6                 # fused scatter rhs
    b += sub(n_nodes) * lane(2 * hd) * 4            # scatter result
    return b


def multihead_attention_forward(params, edge_index, h, e, *,
                                num_heads, out_dim, edge_tile=512,
                                num_core_splits=2, vmem_limit_bytes=None):
    """Returns (h_out [N,H,D], e_out [E,H,D]) — same math as the PyTorch module."""
    n_nodes = h.shape[0]
    n_edges = edge_index.shape[1]
    in_node_dim = h.shape[1]
    in_edge_dim = e.shape[1]
    hd = num_heads * out_dim
    nc = int(num_core_splits)

    # Edge tile: full (8-aligned) extent for small graphs, 128-multiple
    # otherwise (keeps every BlockSpec on the (8, 128) tiling rule).
    if n_edges <= edge_tile:
        te = _round_up(max(n_edges, 8), 8)
    else:
        te = _round_up(edge_tile, 128)
    n_tiles = _round_up(-(-n_edges // te), nc)        # cdiv, rounded up to nc
    tiles_per_core = n_tiles // nc
    e_pad = n_tiles * te

    idx = edge_index.astype(jnp.int32)
    # pad with n_nodes: matches no node -> padded edges are inert
    idx_en = jnp.transpose(
        jnp.pad(idx, ((0, 0), (0, e_pad - n_edges)), constant_values=n_nodes))
    e_feats = jnp.pad(e.astype(jnp.float32), ((0, e_pad - n_edges), (0, 0)))
    h = h.astype(jnp.float32)

    # block-diagonal [HD, HD]: one matmul sums the D lanes of each head AND
    # broadcasts the sum back over those lanes.
    blk = jnp.kron(jnp.eye(num_heads, dtype=jnp.float32),
                   jnp.ones((out_dim, out_dim), jnp.float32))

    if vmem_limit_bytes is None:
        est = _vmem_bytes(n_nodes, in_node_dim, in_edge_dim, hd, te)
        vmem_limit_bytes = int(min(100 * 2**20, max(32 * 2**20, est * 5 // 4)))

    const2d = lambda a: pl.BlockSpec(a.shape, lambda c, i: (0, 0))
    edge_map = lambda c, i: (c * tiles_per_core + i, 0)

    kernel = functools.partial(_mha_kernel, num_heads=num_heads, out_dim=out_dim)

    wv_p, za_p, cnt_p, e_out_flat = pl.pallas_call(
        kernel,
        out_shape=(
            jax.ShapeDtypeStruct((nc, n_nodes, hd), jnp.float32),   # wV partials
            jax.ShapeDtypeStruct((nc, n_nodes, hd), jnp.float32),   # sum(a) partials
            jax.ShapeDtypeStruct((nc, n_nodes, 8), jnp.float32),    # count partials
            jax.ShapeDtypeStruct((e_pad, hd), jnp.float32),         # e_out
        ),
        grid_spec=pltpu.PrefetchScalarGridSpec(
            num_scalar_prefetch=0,
            grid=(nc, tiles_per_core),
            in_specs=[
                pl.BlockSpec((te, 2), edge_map),                    # edge indices
                const2d(h),                                         # node features
                pl.BlockSpec((te, in_edge_dim), edge_map),          # edge features
                const2d(params["Wq"]), const2d(params["bq"]),
                const2d(params["Wk"]), const2d(params["bk"]),
                const2d(params["Wv"]), const2d(params["bv"]),
                const2d(params["We"]), const2d(params["be"]),
                const2d(blk),
            ],
            out_specs=[
                pl.BlockSpec((None, n_nodes, hd), lambda c, i: (c, 0, 0)),
                pl.BlockSpec((None, n_nodes, hd), lambda c, i: (c, 0, 0)),
                pl.BlockSpec((None, n_nodes, 8), lambda c, i: (c, 0, 0)),
                pl.BlockSpec((te, hd), edge_map),
            ],
            scratch_shapes=[
                pltpu.VMEM((n_nodes, hd), jnp.bfloat16),            # Q_h
                pltpu.VMEM((n_nodes, hd), jnp.bfloat16),            # K_h / sqrt(d)
                pltpu.VMEM((n_nodes, hd), jnp.bfloat16),            # V_h
            ]),
        compiler_params=pltpu.CompilerParams(
            dimension_semantics=("parallel", "arbitrary"),
            vmem_limit_bytes=vmem_limit_bytes),
    )(idx_en, h, e_feats,
      params["Wq"], params["bq"], params["Wk"], params["bk"],
      params["Wv"], params["bv"], params["We"], params["be"], blk)

    # combine the per-core partials (trivial XLA epilogue) and normalize
    wv = jnp.sum(wv_p, axis=0)                          # [N, HD]   scatter-sum
    a_sum = jnp.sum(za_p, axis=0)                       # [N, HD]   (broadcast over D)
    cnt = jnp.sum(cnt_p[:, :, 0], axis=0)               # [N]
    z = a_sum / jnp.maximum(cnt, 1.0)[:, None]          # scatter-mean
    h_out = (wv / (z + 1e-6)).reshape(n_nodes, num_heads, out_dim)
    e_out = e_out_flat[:n_edges].reshape(n_edges, num_heads, out_dim)
    return h_out, e_out


def _init_linear(key, in_dim, out_dim, dtype=jnp.float32):
    """PyTorch-style Linear init; weight stored as [in, out], bias as [1, out]."""
    kw, kb = jax.random.split(key)
    bound = 1.0 / math.sqrt(in_dim)
    w = jax.random.uniform(kw, (in_dim, out_dim), dtype, -bound, bound)
    b = jax.random.uniform(kb, (1, out_dim), dtype, -bound, bound)
    return w, b


def make_params(key, in_node_dim, in_edge_dim, out_dim, num_heads, use_bias=True):
    hd = out_dim * num_heads
    kq, kk, kv, ke = jax.random.split(key, 4)
    wq, bq = _init_linear(kq, in_node_dim, hd)
    wk, bk = _init_linear(kk, in_node_dim, hd)
    wv, bv = _init_linear(kv, in_node_dim, hd)
    we, be = _init_linear(ke, in_edge_dim, hd)
    if not use_bias:
        bq, bk, bv, be = (jnp.zeros_like(b) for b in (bq, bk, bv, be))
    return dict(Wq=wq, bq=bq, Wk=wk, bk=bk, Wv=wv, bv=bv, We=we, be=be)


def ref_forward(params, edge_index, h, e, num_heads, out_dim):
    """Plain-JAX f32 reference with the exact PyTorch-module semantics."""
    n_nodes = h.shape[0]
    proj = lambda x, w, b: (x @ w + b).reshape(x.shape[0], num_heads, out_dim)
    q = proj(h, params["Wq"], params["bq"])
    k = proj(h, params["Wk"], params["bk"])
    v = proj(h, params["Wv"], params["bv"])
    pe = proj(e, params["We"], params["be"])
    src, dst = edge_index[0], edge_index[1]
    score = k[src] * q[dst] / math.sqrt(out_dim) + pe            # [E, H, D]
    e_out = score
    a = jnp.exp(jnp.clip(jnp.sum(score, -1, keepdims=True), -5.0, 5.0))  # [E, H, 1]
    msg = v[src] * a
    wv = jax.ops.segment_sum(msg, src, num_segments=n_nodes)
    a_sum = jax.ops.segment_sum(a, src, num_segments=n_nodes)
    cnt = jax.ops.segment_sum(jnp.ones_like(a), src, num_segments=n_nodes)
    z = a_sum / jnp.maximum(cnt, 1.0)                            # scatter-mean
    h_out = wv / (z + 1e-6)
    return h_out, e_out


if __name__ == "__main__":
    in_node_dim, in_edge_dim = 24, 8
    out_dim, num_heads = 16, 8          # H*D = 128 -> lane-dense VMEM slabs
    n_nodes, n_edges = 12, 40

    key = jax.random.PRNGKey(0)
    kp, kh, ke, kg = jax.random.split(key, 4)
    params = make_params(kp, in_node_dim, in_edge_dim, out_dim, num_heads,
                         use_bias=True)
    h = jax.random.normal(kh, (n_nodes, in_node_dim), jnp.float32)
    e = jax.random.normal(ke, (n_edges, in_edge_dim), jnp.float32)
    edge_index = jax.random.randint(kg, (2, n_edges), 0, n_nodes, jnp.int32)

    fwd = jax.jit(functools.partial(multihead_attention_forward,
                                    num_heads=num_heads, out_dim=out_dim))
    h_out, e_out = fwd(params, edge_index, h, e)
    jax.block_until_ready((h_out, e_out))

    ref_h, ref_e = ref_forward(params, edge_index, h, e, num_heads, out_dim)
    assert h_out.shape == (n_nodes, num_heads, out_dim)
    assert e_out.shape == (n_edges, num_heads, out_dim)
    # Q/K/V live in bf16 scratch and the scatter runs in bf16 (f32 accumulate),
    # so compare against the f32 reference with bf16-appropriate tolerances.
    assert jnp.allclose(e_out, ref_e, atol=2e-2, rtol=2e-2)
    assert jnp.allclose(h_out, ref_h, atol=5e-2, rtol=5e-2)

    print("KERNEL_OK")
</pallas_src>

<mosaic_0001>
module attributes {stable_mosaic.version = 11 : i64} {
  func.func @_mha_kernel(%arg0: i32, %arg1: i32, %arg2: memref<40x2xi32, #tpu.memory_space<vmem>>, %arg3: memref<12x24xf32, #tpu.memory_space<vmem>>, %arg4: memref<40x8xf32, #tpu.memory_space<vmem>>, %arg5: memref<24x128xf32, #tpu.memory_space<vmem>>, %arg6: memref<1x128xf32, #tpu.memory_space<vmem>>, %arg7: memref<24x128xf32, #tpu.memory_space<vmem>>, %arg8: memref<1x128xf32, #tpu.memory_space<vmem>>, %arg9: memref<24x128xf32, #tpu.memory_space<vmem>>, %arg10: memref<1x128xf32, #tpu.memory_space<vmem>>, %arg11: memref<8x128xf32, #tpu.memory_space<vmem>>, %arg12: memref<1x128xf32, #tpu.memory_space<vmem>>, %arg13: memref<128x128xf32, #tpu.memory_space<vmem>>, %arg14: memref<1x12x128xf32, #tpu.memory_space<vmem>>, %arg15: memref<1x12x128xf32, #tpu.memory_space<vmem>>, %arg16: memref<1x12x8xf32, #tpu.memory_space<vmem>>, %arg17: memref<40x128xf32, #tpu.memory_space<vmem>>, %arg18: memref<12x128xbf16, #tpu.memory_space<vmem>>, %arg19: memref<12x128xbf16, #tpu.memory_space<vmem>>, %arg20: memref<12x128xbf16, #tpu.memory_space<vmem>>) attributes {dimension_semantics = [#tpu.dimension_semantics<parallel>, #tpu.dimension_semantics<arbitrary>], iteration_bounds = array<i64: 2, 1>, scalar_prefetch = 0 : i64, scratch_operands = 3 : i64, tpu.core_type = #tpu.core_type<tc>, window_params = [{transform_indices = @transform_0, window_bounds = array<i64: 40, 2>}, {pipeline_mode = #tpu.pipeline_mode<synchronous>, transform_indices = @transform_1, window_bounds = array<i64: 12, 24>}, {transform_indices = @transform_2, window_bounds = array<i64: 40, 8>}, {pipeline_mode = #tpu.pipeline_mode<synchronous>, transform_indices = @transform_3, window_bounds = array<i64: 24, 128>}, {pipeline_mode = #tpu.pipeline_mode<synchronous>, transform_indices = @transform_4, window_bounds = array<i64: 1, 128>}, {pipeline_mode = #tpu.pipeline_mode<synchronous>, transform_indices = @transform_5, window_bounds = array<i64: 24, 128>}, {pipeline_mode = #tpu.pipeline_mode<synchronous>, transform_indices = @transform_6, window_bounds = array<i64: 1, 128>}, {pipeline_mode = #tpu.pipeline_mode<synchronous>, transform_indices = @transform_7, window_bounds = array<i64: 24, 128>}, {pipeline_mode = #tpu.pipeline_mode<synchronous>, transform_indices = @transform_8, window_bounds = array<i64: 1, 128>}, {pipeline_mode = #tpu.pipeline_mode<synchronous>, transform_indices = @transform_9, window_bounds = array<i64: 8, 128>}, {pipeline_mode = #tpu.pipeline_mode<synchronous>, transform_indices = @transform_10, window_bounds = array<i64: 1, 128>}, {pipeline_mode = #tpu.pipeline_mode<synchronous>, transform_indices = @transform_11, window_bounds = array<i64: 128, 128>}, {transform_indices = @transform_12, window_bounds = array<i64: 1, 12, 128>}, {transform_indices = @transform_13, window_bounds = array<i64: 1, 12, 128>}, {transform_indices = @transform_14, window_bounds = array<i64: 1, 12, 8>}, {transform_indices = @transform_15, window_bounds = array<i64: 40, 128>}]} {
    %c0_i32 = arith.constant 0 : i32
    %0 = arith.cmpi eq, %arg1, %c0_i32 : i32
    %1 = arith.extui %0 : i1 to i32
    %c0_i32_0 = arith.constant 0 : i32
    %2 = arith.cmpi ne, %1, %c0_i32_0 : i32
    scf.if %2 {
      %c0_46 = arith.constant 0 : index
      %c0_47 = arith.constant 0 : index
      %64 = vector.load %arg3[%c0_46, %c0_47] : memref<12x24xf32, #tpu.memory_space<vmem>>, vector<12x24xf32>
      %c0_48 = arith.constant 0 : index
      %c0_49 = arith.constant 0 : index
      %65 = vector.load %arg5[%c0_48, %c0_49] : memref<24x128xf32, #tpu.memory_space<vmem>>, vector<24x128xf32>
      %cst_50 = arith.constant dense<0.000000e+00> : vector<12x128xf32>
      %66 = tpu.matmul %64, %65, %cst_50 {dimension_numbers = #tpu.dot_dimension_numbers<[1], [0], [0], [1], [0, 0, 1, 1], [], []>} : vector<12x24xf32>, vector<24x128xf32>, vector<12x128xf32> -> vector<12x128xf32>
      %c0_51 = arith.constant 0 : index
      %c0_52 = arith.constant 0 : index
      %67 = vector.load %arg6[%c0_51, %c0_52] : memref<1x128xf32, #tpu.memory_space<vmem>>, vector<1x128xf32>
      %68 = vector.broadcast %67 : vector<1x128xf32> to vector<12x128xf32>
      %69 = arith.addf %66, %68 : vector<12x128xf32>
      %70 = arith.truncf %69 : vector<12x128xf32> to vector<12x128xbf16>
      %c0_53 = arith.constant 0 : index
      %c0_54 = arith.constant 0 : index
      %71 = vector.load %arg18[%c0_53, %c0_54] : memref<12x128xbf16, #tpu.memory_space<vmem>>, vector<12x128xbf16>
      tpu.vector_store %arg18[%c0_53, %c0_54], %70 {strides = array<i32>} : memref<12x128xbf16, #tpu.memory_space<vmem>>, vector<12x128xbf16>,
      %c0_55 = arith.constant 0 : index
      %c0_56 = arith.constant 0 : index
      %72 = vector.load %arg7[%c0_55, %c0_56] : memref<24x128xf32, #tpu.memory_space<vmem>>, vector<24x128xf32>
      %cst_57 = arith.constant dense<0.000000e+00> : vector<12x128xf32>
      %73 = tpu.matmul %64, %72, %cst_57 {dimension_numbers = #tpu.dot_dimension_numbers<[1], [0], [0], [1], [0, 0, 1, 1], [], []>} : vector<12x24xf32>, vector<24x128xf32>, vector<12x128xf32> -> vector<12x128xf32>
      %c0_58 = arith.constant 0 : index
      %c0_59 = arith.constant 0 : index
      %74 = vector.load %arg8[%c0_58, %c0_59] : memref<1x128xf32, #tpu.memory_space<vmem>>, vector<1x128xf32>
      %75 = vector.broadcast %74 : vector<1x128xf32> to vector<12x128xf32>
      %76 = arith.addf %73, %75 : vector<12x128xf32>
      %cst_60 = arith.constant 2.500000e-01 : f32
      %77 = vector.broadcast %cst_60 : f32 to vector<12x128xf32>
      %78 = arith.mulf %76, %77 : vector<12x128xf32>
      %79 = arith.truncf %78 : vector<12x128xf32> to vector<12x128xbf16>
      %c0_61 = arith.constant 0 : index
      %c0_62 = arith.constant 0 : index
      %80 = vector.load %arg19[%c0_61, %c0_62] : memref<12x128xbf16, #tpu.memory_space<vmem>>, vector<12x128xbf16>
      tpu.vector_store %arg19[%c0_61, %c0_62], %79 {strides = array<i32>} : memref<12x128xbf16, #tpu.memory_space<vmem>>, vector<12x128xbf16>,
      %c0_63 = arith.constant 0 : index
      %c0_64 = arith.constant 0 : index
      %81 = vector.load %arg9[%c0_63, %c0_64] : memref<24x128xf32, #tpu.memory_space<vmem>>, vector<24x128xf32>
      %cst_65 = arith.constant dense<0.000000e+00> : vector<12x128xf32>
      %82 = tpu.matmul %64, %81, %cst_65 {dimension_numbers = #tpu.dot_dimension_numbers<[1], [0], [0], [1], [0, 0, 1, 1], [], []>} : vector<12x24xf32>, vector<24x128xf32>, vector<12x128xf32> -> vector<12x128xf32>
      %c0_66 = arith.constant 0 : index
      %c0_67 = arith.constant 0 : index
      %83 = vector.load %arg10[%c0_66, %c0_67] : memref<1x128xf32, #tpu.memory_space<vmem>>, vector<1x128xf32>
      %84 = vector.broadcast %83 : vector<1x128xf32> to vector<12x128xf32>
      %85 = arith.addf %82, %84 : vector<12x128xf32>
      %86 = arith.truncf %85 : vector<12x128xf32> to vector<12x128xbf16>
      %c0_68 = arith.constant 0 : index
      %c0_69 = arith.constant 0 : index
      %87 = vector.load %arg20[%c0_68, %c0_69] : memref<12x128xbf16, #tpu.memory_space<vmem>>, vector<12x128xbf16>
      tpu.vector_store %arg20[%c0_68, %c0_69], %86 {strides = array<i32>} : memref<12x128xbf16, #tpu.memory_space<vmem>>, vector<12x128xbf16>,
      %cst_70 = arith.constant 0.000000e+00 : f32
      %88 = vector.broadcast %cst_70 : f32 to vector<12x128xf32>
      %c0_71 = arith.constant 0 : index
      %c0_72 = arith.constant 0 : index
      %c0_73 = arith.constant 0 : index
      %89 = vector.load %arg14[%c0_71, %c0_72, %c0_73] : memref<1x12x128xf32, #tpu.memory_space<vmem>>, vector<1x12x128xf32>
      %90 = vector.shape_cast %89 : vector<1x12x128xf32> to vector<12x128xf32>
      %91 = vector.shape_cast %88 : vector<12x128xf32> to vector<1x12x128xf32>
      tpu.vector_store %arg14[%c0_71, %c0_72, %c0_73], %91 {strides = array<i32>} : memref<1x12x128xf32, #tpu.memory_space<vmem>>, vector<1x12x128xf32>,
      %cst_74 = arith.constant 0.000000e+00 : f32
      %92 = vector.broadcast %cst_74 : f32 to vector<12x128xf32>
      %c0_75 = arith.constant 0 : index
      %c0_76 = arith.constant 0 : index
      %c0_77 = arith.constant 0 : index
      %93 = vector.load %arg15[%c0_75, %c0_76, %c0_77] : memref<1x12x128xf32, #tpu.memory_space<vmem>>, vector<1x12x128xf32>
      %94 = vector.shape_cast %93 : vector<1x12x128xf32> to vector<12x128xf32>
      %95 = vector.shape_cast %92 : vector<12x128xf32> to vector<1x12x128xf32>
      tpu.vector_store %arg15[%c0_75, %c0_76, %c0_77], %95 {strides = array<i32>} : memref<1x12x128xf32, #tpu.memory_space<vmem>>, vector<1x12x128xf32>,
      %cst_78 = arith.constant 0.000000e+00 : f32
      %96 = vector.broadcast %cst_78 : f32 to vector<12x8xf32>
      %c0_79 = arith.constant 0 : index
      %c0_80 = arith.constant 0 : index
      %c0_81 = arith.constant 0 : index
      %97 = vector.load %arg16[%c0_79, %c0_80, %c0_81] : memref<1x12x8xf32, #tpu.memory_space<vmem>>, vector<1x12x8xf32>
      %98 = vector.shape_cast %97 : vector<1x12x8xf32> to vector<12x8xf32>
      %99 = vector.shape_cast %96 : vector<12x8xf32> to vector<1x12x8xf32>
      tpu.vector_store %arg16[%c0_79, %c0_80, %c0_81], %99 {strides = array<i32>} : memref<1x12x8xf32, #tpu.memory_space<vmem>>, vector<1x12x8xf32>,
    } else {
    }
    %c0 = arith.constant 0 : index
    %c0_1 = arith.constant 0 : index
    %3 = vector.load %arg4[%c0, %c0_1] : memref<40x8xf32, #tpu.memory_space<vmem>>, vector<40x8xf32>
    %c0_2 = arith.constant 0 : index
    %c0_3 = arith.constant 0 : index
    %4 = vector.load %arg11[%c0_2, %c0_3] : memref<8x128xf32, #tpu.memory_space<vmem>>, vector<8x128xf32>
    %cst = arith.constant dense<0.000000e+00> : vector<40x128xf32>
    %5 = tpu.matmul %3, %4, %cst {dimension_numbers = #tpu.dot_dimension_numbers<[1], [0], [0], [1], [0, 0, 1, 1], [], []>} : vector<40x8xf32>, vector<8x128xf32>, vector<40x128xf32> -> vector<40x128xf32>
    %c0_4 = arith.constant 0 : index
    %c0_5 = arith.constant 0 : index
    %6 = vector.load %arg12[%c0_4, %c0_5] : memref<1x128xf32, #tpu.memory_space<vmem>>, vector<1x128xf32>
    %7 = vector.broadcast %6 : vector<1x128xf32> to vector<40x128xf32>
    %8 = arith.addf %5, %7 : vector<40x128xf32>
    %c0_6 = arith.constant 0 : index
    %c0_7 = arith.constant 0 : index
    %9 = vector.load %arg2[%c0_6, %c0_7] : memref<40x2xi32, #tpu.memory_space<vmem>>, vector<40x1xi32>
    %c0_8 = arith.constant 0 : index
    %c1 = arith.constant 1 : index
    %10 = vector.load %arg2[%c0_8, %c1] : memref<40x2xi32, #tpu.memory_space<vmem>>, vector<40x1xi32>
    %11 = tpu.iota {dimensions = array<i32: 1>} : vector<40x12xi32>
    %12 = vector.broadcast %9 : vector<40x1xi32> to vector<40x12xi32>
    %13 = arith.cmpi eq, %11, %12 : vector<40x12xi32>
    %14 = arith.extui %13 : vector<40x12xi1> to vector<40x12xi32>
    %15 = arith.sitofp %14 : vector<40x12xi32> to vector<40x12xf32>
    %16 = arith.truncf %15 : vector<40x12xf32> to vector<40x12xbf16>
    %17 = vector.broadcast %10 : vector<40x1xi32> to vector<40x12xi32>
    %18 = arith.cmpi eq, %11, %17 : vector<40x12xi32>
    %19 = arith.extui %18 : vector<40x12xi1> to vector<40x12xi32>
    %20 = arith.sitofp %19 : vector<40x12xi32> to vector<40x12xf32>
    %21 = arith.truncf %20 : vector<40x12xf32> to vector<40x12xbf16>
    %c0_9 = arith.constant 0 : index
    %c0_10 = arith.constant 0 : index
    %22 = vector.load %arg19[%c0_9, %c0_10] : memref<12x128xbf16, #tpu.memory_space<vmem>>, vector<12x128xbf16>
    %cst_11 = arith.constant dense<0.000000e+00> : vector<40x128xf32>
    %23 = tpu.matmul %16, %22, %cst_11 {dimension_numbers = #tpu.dot_dimension_numbers<[1], [0], [0], [1], [0, 0, 1, 1], [], []>} : vector<40x12xbf16>, vector<12x128xbf16>, vector<40x128xf32> -> vector<40x128xf32>
    %c0_12 = arith.constant 0 : index
    %c0_13 = arith.constant 0 : index
    %24 = vector.load %arg18[%c0_12, %c0_13] : memref<12x128xbf16, #tpu.memory_space<vmem>>, vector<12x128xbf16>
    %cst_14 = arith.constant dense<0.000000e+00> : vector<40x128xf32>
    %25 = tpu.matmul %21, %24, %cst_14 {dimension_numbers = #tpu.dot_dimension_numbers<[1], [0], [0], [1], [0, 0, 1, 1], [], []>} : vector<40x12xbf16>, vector<12x128xbf16>, vector<40x128xf32> -> vector<40x128xf32>
    %c0_15 = arith.constant 0 : index
    %c0_16 = arith.constant 0 : index
    %26 = vector.load %arg20[%c0_15, %c0_16] : memref<12x128xbf16, #tpu.memory_space<vmem>>, vector<12x128xbf16>
    %cst_17 = arith.constant dense<0.000000e+00> : vector<40x128xf32>
    %27 = tpu.matmul %16, %26, %cst_17 {dimension_numbers = #tpu.dot_dimension_numbers<[1], [0], [0], [1], [0, 0, 1, 1], [], []>} : vector<40x12xbf16>, vector<12x128xbf16>, vector<40x128xf32> -> vector<40x128xf32>
    %28 = arith.mulf %23, %25 : vector<40x128xf32>
    %29 = arith.addf %28, %8 : vector<40x128xf32>
    %c0_18 = arith.constant 0 : index
    %c0_19 = arith.constant 0 : index
    %30 = vector.load %arg17[%c0_18, %c0_19] : memref<40x128xf32, #tpu.memory_space<vmem>>, vector<40x128xf32>
    tpu.vector_store %arg17[%c0_18, %c0_19], %29 {strides = array<i32>} : memref<40x128xf32, #tpu.memory_space<vmem>>, vector<40x128xf32>,
    %c0_20 = arith.constant 0 : index
    %c0_21 = arith.constant 0 : index
    %31 = vector.load %arg13[%c0_20, %c0_21] : memref<128x128xf32, #tpu.memory_space<vmem>>, vector<128x128xf32>
    %cst_22 = arith.constant dense<0.000000e+00> : vector<40x128xf32>
    %32 = tpu.matmul %29, %31, %cst_22 {dimension_numbers = #tpu.dot_dimension_numbers<[1], [0], [0], [1], [0, 0, 1, 1], [], []>} : vector<40x128xf32>, vector<128x128xf32>, vector<40x128xf32> -> vector<40x128xf32>
    %cst_23 = arith.constant -5.000000e+00 : f32
    %cst_24 = arith.constant 5.000000e+00 : f32
    %33 = vector.broadcast %cst_23 : f32 to vector<40x128xf32>
    %34 = arith.maximumf %33, %32 : vector<40x128xf32>
    %35 = vector.broadcast %cst_24 : f32 to vector<40x128xf32>
    %36 = arith.minimumf %35, %34 : vector<40x128xf32>
    %37 = math.exp %36 : vector<40x128xf32>
    %38 = arith.mulf %27, %37 : vector<40x128xf32>
    %39 = tpu.concatenate %38, %37 in 1 : vector<40x128xf32>, vector<40x128xf32> -> vector<40x256xf32>
    %40 = arith.truncf %39 : vector<40x256xf32> to vector<40x256xbf16>
    %cst_25 = arith.constant dense<0.000000e+00> : vector<12x256xf32>
    %41 = tpu.matmul %16, %40, %cst_25 {dimension_numbers = #tpu.dot_dimension_numbers<[0], [0], [1], [1], [0, 1, 1, 1], [], []>} : vector<40x12xbf16>, vector<40x256xbf16>, vector<12x256xf32> -> vector<12x256xf32>
    %c0_26 = arith.constant 0 : index
    %c0_27 = arith.constant 0 : index
    %c0_28 = arith.constant 0 : index
    %42 = vector.load %arg14[%c0_26, %c0_27, %c0_28] : memref<1x12x128xf32, #tpu.memory_space<vmem>>, vector<1x12x128xf32>
    %43 = vector.shape_cast %42 : vector<1x12x128xf32> to vector<12x128xf32>
    %44 = vector.extract_strided_slice %41 {offsets = [0, 0], sizes = [12, 128], strides = [1, 1]} : vector<12x256xf32> to vector<12x128xf32>
    %45 = arith.addf %43, %44 : vector<12x128xf32>
    %c0_29 = arith.constant 0 : index
    %c0_30 = arith.constant 0 : index
    %c0_31 = arith.constant 0 : index
    %46 = vector.load %arg14[%c0_29, %c0_30, %c0_31] : memref<1x12x128xf32, #tpu.memory_space<vmem>>, vector<1x12x128xf32>
    %47 = vector.shape_cast %46 : vector<1x12x128xf32> to vector<12x128xf32>
    %48 = vector.shape_cast %45 : vector<12x128xf32> to vector<1x12x128xf32>
    tpu.vector_store %arg14[%c0_29, %c0_30, %c0_31], %48 {strides = array<i32>} : memref<1x12x128xf32, #tpu.memory_space<vmem>>, vector<1x12x128xf32>,
    %c0_32 = arith.constant 0 : index
    %c0_33 = arith.constant 0 : index
    %c0_34 = arith.constant 0 : index
    %49 = vector.load %arg15[%c0_32, %c0_33, %c0_34] : memref<1x12x128xf32, #tpu.memory_space<vmem>>, vector<1x12x128xf32>
    %50 = vector.shape_cast %49 : vector<1x12x128xf32> to vector<12x128xf32>
    %51 = vector.extract_strided_slice %41 {offsets = [0, 128], sizes = [12, 128], strides = [1, 1]} : vector<12x256xf32> to vector<12x128xf32>
    %52 = arith.addf %50, %51 : vector<12x128xf32>
    %c0_35 = arith.constant 0 : index
    %c0_36 = arith.constant 0 : index
    %c0_37 = arith.constant 0 : index
    %53 = vector.load %arg15[%c0_35, %c0_36, %c0_37] : memref<1x12x128xf32, #tpu.memory_space<vmem>>, vector<1x12x128xf32>
    %54 = vector.shape_cast %53 : vector<1x12x128xf32> to vector<12x128xf32>
    %55 = vector.shape_cast %52 : vector<12x128xf32> to vector<1x12x128xf32>
    tpu.vector_store %arg15[%c0_35, %c0_36, %c0_37], %55 {strides = array<i32>} : memref<1x12x128xf32, #tpu.memory_space<vmem>>, vector<1x12x128xf32>,
    %c0_38 = arith.constant 0 : index
    %c0_39 = arith.constant 0 : index
    %c0_40 = arith.constant 0 : index
    %56 = vector.load %arg16[%c0_38, %c0_39, %c0_40] : memref<1x12x8xf32, #tpu.memory_space<vmem>>, vector<1x12x8xf32>
    %57 = vector.shape_cast %56 : vector<1x12x8xf32> to vector<12x8xf32>
    %cst_41 = arith.constant 1.000000e+00 : bf16
    %58 = vector.broadcast %cst_41 : bf16 to vector<40x8xbf16>
    %cst_42 = arith.constant dense<0.000000e+00> : vector<12x8xf32>
    %59 = tpu.matmul %16, %58, %cst_42 {dimension_numbers = #tpu.dot_dimension_numbers<[0], [0], [1], [1], [0, 1, 1, 1], [], []>} : vector<40x12xbf16>, vector<40x8xbf16>, vector<12x8xf32> -> vector<12x8xf32>
    %60 = arith.addf %57, %59 : vector<12x8xf32>
    %c0_43 = arith.constant 0 : index
    %c0_44 = arith.constant 0 : index
    %c0_45 = arith.constant 0 : index
    %61 = vector.load %arg16[%c0_43, %c0_44, %c0_45] : memref<1x12x8xf32, #tpu.memory_space<vmem>>, vector<1x12x8xf32>
    %62 = vector.shape_cast %61 : vector<1x12x8xf32> to vector<12x8xf32>
    %63 = vector.shape_cast %60 : vector<12x8xf32> to vector<1x12x8xf32>
    tpu.vector_store %arg16[%c0_43, %c0_44, %c0_45], %63 {strides = array<i32>} : memref<1x12x8xf32, #tpu.memory_space<vmem>>, vector<1x12x8xf32>,
    return
  }
  func.func @transform_0(%arg0: i32, %arg1: i32) -> (i32, i32) {
    %c1_i32 = arith.constant 1 : i32
    %0 = arith.muli %arg0, %c1_i32 : i32
    %1 = arith.addi %0, %arg1 : i32
    %c0_i32 = arith.constant 0 : i32
    %c0_i32_0 = arith.constant 0 : i32
    return %1, %c0_i32 : i32, i32
  }
  func.func @transform_1(%arg0: i32, %arg1: i32) -> (i32, i32) {
    %c0_i32 = arith.constant 0 : i32
    %c0_i32_0 = arith.constant 0 : i32
    %c0_i32_1 = arith.constant 0 : i32
    return %c0_i32, %c0_i32_0 : i32, i32
  }
  func.func @transform_2(%arg0: i32, %arg1: i32) -> (i32, i32) {
    %c1_i32 = arith.constant 1 : i32
    %0 = arith.muli %arg0, %c1_i32 : i32
    %1 = arith.addi %0, %arg1 : i32
    %c0_i32 = arith.constant 0 : i32
    %c0_i32_0 = arith.constant 0 : i32
    return %1, %c0_i32 : i32, i32
  }
  func.func @transform_3(%arg0: i32, %arg1: i32) -> (i32, i32) {
    %c0_i32 = arith.constant 0 : i32
    %c0_i32_0 = arith.constant 0 : i32
    %c0_i32_1 = arith.constant 0 : i32
    return %c0_i32, %c0_i32_0 : i32, i32
  }
  func.func @transform_4(%arg0: i32, %arg1: i32) -> (i32, i32) {
    %c0_i32 = arith.constant 0 : i32
    %c0_i32_0 = arith.constant 0 : i32
    %c0_i32_1 = arith.constant 0 : i32
    return %c0_i32, %c0_i32_0 : i32, i32
  }
  func.func @transform_5(%arg0: i32, %arg1: i32) -> (i32, i32) {
    %c0_i32 = arith.constant 0 : i32
    %c0_i32_0 = arith.constant 0 : i32
    %c0_i32_1 = arith.constant 0 : i32
    return %c0_i32, %c0_i32_0 : i32, i32
  }
  func.func @transform_6(%arg0: i32, %arg1: i32) -> (i32, i32) {
    %c0_i32 = arith.constant 0 : i32
    %c0_i32_0 = arith.constant 0 : i32
    %c0_i32_1 = arith.constant 0 : i32
    return %c0_i32, %c0_i32_0 : i32, i32
  }
  func.func @transform_7(%arg0: i32, %arg1: i32) -> (i32, i32) {
    %c0_i32 = arith.constant 0 : i32
    %c0_i32_0 = arith.constant 0 : i32
    %c0_i32_1 = arith.constant 0 : i32
    return %c0_i32, %c0_i32_0 : i32, i32
  }
  func.func @transform_8(%arg0: i32, %arg1: i32) -> (i32, i32) {
    %c0_i32 = arith.constant 0 : i32
    %c0_i32_0 = arith.constant 0 : i32
    %c0_i32_1 = arith.constant 0 : i32
    return %c0_i32, %c0_i32_0 : i32, i32
  }
  func.func @transform_9(%arg0: i32, %arg1: i32) -> (i32, i32) {
    %c0_i32 = arith.constant 0 : i32
    %c0_i32_0 = arith.constant 0 : i32
    %c0_i32_1 = arith.constant 0 : i32
    return %c0_i32, %c0_i32_0 : i32, i32
  }
  func.func @transform_10(%arg0: i32, %arg1: i32) -> (i32, i32) {
    %c0_i32 = arith.constant 0 : i32
    %c0_i32_0 = arith.constant 0 : i32
    %c0_i32_1 = arith.constant 0 : i32
    return %c0_i32, %c0_i32_0 : i32, i32
  }
  func.func @transform_11(%arg0: i32, %arg1: i32) -> (i32, i32) {
    %c0_i32 = arith.constant 0 : i32
    %c0_i32_0 = arith.constant 0 : i32
    %c0_i32_1 = arith.constant 0 : i32
    return %c0_i32, %c0_i32_0 : i32, i32
  }
  func.func @transform_12(%arg0: i32, %arg1: i32) -> (i32, i32, i32) {
    %c0_i32 = arith.constant 0 : i32
    %c0_i32_0 = arith.constant 0 : i32
    %c0_i32_1 = arith.constant 0 : i32
    return %arg0, %c0_i32, %c0_i32_0 : i32, i32, i32
  }
  func.func @transform_13(%arg0: i32, %arg1: i32) -> (i32, i32, i32) {
    %c0_i32 = arith.constant 0 : i32
    %c0_i32_0 = arith.constant 0 : i32
    %c0_i32_1 = arith.constant 0 : i32
    return %arg0, %c0_i32, %c0_i32_0 : i32, i32, i32
  }
  func.func @transform_14(%arg0: i32, %arg1: i32) -> (i32, i32, i32) {
    %c0_i32 = arith.constant 0 : i32
    %c0_i32_0 = arith.constant 0 : i32
    %c0_i32_1 = arith.constant 0 : i32
    return %arg0, %c0_i32, %c0_i32_0 : i32, i32, i32
  }
  func.func @transform_15(%arg0: i32, %arg1: i32) -> (i32, i32) {
    %c1_i32 = arith.constant 1 : i32
    %0 = arith.muli %arg0, %c1_i32 : i32
    %1 = arith.addi %0, %arg1 : i32
    %c0_i32 = arith.constant 0 : i32
    %c0_i32_0 = arith.constant 0 : i32
    return %1, %c0_i32 : i32, i32
  }
}

</mosaic_0001>

<bundles_post_ra>
// kernel: multihead_attention_forward.1
= control target key start
LH: loop header
LB: loop body
LE: loop exit
PB: predicated region body
PF: predicated region fallthrough
CT: control target
= control target key end

     0   :  { %s2244_s18 = smov 0   ;;  %s2246_s19 = smov 0   ;;  %s2561_s0 = inlined_call_operand.vmem [shape: s32[80,2], index: 0, kind: input, shape index: {}]   ;;  %s2562_s1 = inlined_call_operand.vmem [shape: f32[12,24], index: 1, kind: input, shape index: {}]   ;;  %s2563_s2 = inlined_call_operand.vmem [shape: f32[80,8], index: 2, kind: input, shape index: {}]   ;;  %s2564_s3 = inlined_call_operand.vmem [shape: f32[24,128], index: 3, kind: input, shape index: {}]   ;;  %s2565_s4 = inlined_call_operand.vmem [shape: f32[1,128], index: 4, kind: input, shape index: {}]   ;;  %s2566_s5 = inlined_call_operand.vmem [shape: f32[24,128], index: 5, kind: input, shape index: {}]   ;;  %s2567_s6 = inlined_call_operand.vmem [shape: f32[1,128], index: 6, kind: input, shape index: {}]   ;;  %s2568_s7 = inlined_call_operand.vmem [shape: f32[24,128], index: 7, kind: input, shape index: {}]   ;;  %s2569_s8 = inlined_call_operand.vmem [shape: f32[1,128], index: 8, kind: input, shape index: {}]   ;;  %s2570_s9 = inlined_call_operand.vmem [shape: f32[8,128], index: 9, kind: input, shape index: {}]   ;;  %s2571_s10 = inlined_call_operand.vmem [shape: f32[1,128], index: 10, kind: input, shape index: {}]   ;;  %s2572_s11 = inlined_call_operand.vmem [shape: f32[128,128], index: 11, kind: input, shape index: {}]   ;;  %s2573_s12 = inlined_call_operand.vmem [shape: f32[2,12,128], index: 12, kind: output, shape index: {0}]   ;;  %s2574_s13 = inlined_call_operand.vmem [shape: f32[2,12,128], index: 13, kind: output, shape index: {1}]   ;;  %s2575_s14 = inlined_call_operand.vmem [shape: f32[2,12,8], index: 14, kind: output, shape index: {2}]   ;;  %s2576_s15 = inlined_call_operand.vmem [shape: f32[80,128], index: 15, kind: output, shape index: {3}]  }
   0x1   :  { %s2248_s20 = smov 0  }
   0x2 LB: > { %s38_s21 = sadd.s32 1, %s2152_s19  ;;  %p1776_p0 = scmp.ge.s32.totalorder %s2156_s20, 1  ;;  %s2156_s20 = sphi %s2248_s20, %s26_s20   ;;  %s2152_s19 = sphi %s2246_s19, %s2578_s19   ;;  %s2148_s18 = sphi %s2244_s18, %s2577_s18  }
   0x3   : > { %p40_p1 = scmp.ge.s32.totalorder %s38_s21, 2  ;;  %p478_p2 = scmp.lt.s32.totalorder %s2156_s20, 3 }
   0x5   : > { %s2580_s21 = smov (%p40_p1, %s38_s21), 0  ;;  %p479_p3 = pnand %p1776_p0, %p478_p2 }
   0x6   : > { %v596_v0 = vld [vmem:[%s2564_s3] sm:$0xff] (!%p479_p3)  ;;  %v597_v1 = vld [vmem:[%s2564_s3 + $0x8] sm:$0xff] (!%p479_p3)  ;;  %vm606_vm0 = vcmask (!%p479_p3), 195584   ;;  %v2158_v5 = vmov (!%p479_p3), 1   ;;  %v2159_v6 = vmov (!%p479_p3), 0   ;;  %s550_s30 = smul.u32 (!%p479_p3), 5, %s2148_s18  ;;  %v1022_v28 = vlaneseq (!%p479_p3) }
   0x7   : > { %482 = sbr.rel (%p479_p3) target bundleno = 943 (0x3af), region = 68  ;;  %v698_v2 = vld [vmem:[%s2566_s5] sm:$0xff] (!%p479_p3)  ;;  %v2049_v3 = vpack.c.bf16 (!%p479_p3), %v597_v1, %v596_v0  ;;  %v699_v4 = vld [vmem:[%s2566_s5 + $0x8] sm:$0xff] (!%p479_p3)  ;;  %2116 = vset.pattern.permute.xlu1 (!%p479_p3), %v2158_v5  ;;  %2115 = vset.pattern.permute.xlu0 (!%p479_p3), %v2159_v6  ;;  %v598_v8 = vld [vmem:[%s2564_s3 + $0x10] sm:$0xff] (!%p479_p3)  ;;  %v2160_v19 = vmov (!%p479_p3), 0.0   ;;  %vm2161_vm1 = vmmov (!%p479_p3), 0  }
   0x8   : > { %v2053_v7 = vpack.c.bf16 (!%p479_p3), %v699_v4, %v698_v2  ;;  %v594_v9 = vld [vmem:[%s2562_s1] sm:$0xff] (!%p479_p3)  ;;  %v700_v10 = vld [vmem:[%s2566_s5 + $0x10] sm:$0xff] (!%p479_p3)  ;;  %v796_v12 = vld [vmem:[%s2568_s7 + $0x8] sm:$0xff] (!%p479_p3)  ;;  %p551_p4 = scmp.lt.s32.totalorder (!%p479_p3), %s550_s30, 9  ;;  %vm894_vm2 = vcmask (!%p479_p3), 64512   ;;  %v2349_v29 = vand.u32 (!%p479_p3), 127, %v1022_v28 }
   0x9   : > { %2050 = vmatprep.subr.bf16.mxu0 (!%p479_p3), %v2049_v3  ;;  %1912 = vmatprep.mubr.msk.f32.mxu0 (!%p479_p3), %vm606_vm0, %v594_v9  ;;  %v795_v11 = vld [vmem:[%s2568_s7] sm:$0xff] (!%p479_p3)  ;;  %v595_v13 = vld [vmem:[%s2562_s1 + $0x8] sm:$0xf] (!%p479_p3)  ;;  %v797_v15 = vld [vmem:[%s2568_s7 + $0x10] sm:$0xff] (!%p479_p3)  ;;  %vm1107_vm12 = vcmask (!%p479_p3), 1045504   ;;  %vm1097_vm13 = vcmask (!%p479_p3), 97280  }
   0xa   : > { %2054 = vmatprep.subr.bf16.mxu1 (!%p479_p3), %v2053_v7  ;;  %2052 = vmatpush3.bf16.msra.mxu0 (!%p479_p3), %v2049_v3  ;;  %v2057_v14 = vpack.c.bf16 (!%p479_p3), %v796_v12, %v795_v11  ;;  %v903_v17 = vld [vmem:[%s2570_s9] sm:$0xff] (!%p479_p3)  ;;  %v1328_v28 = vld [vmem:[%s2572_s11 + $0x28] sm:$0xff] (!%p479_p3)  ;;  %p565_p5 = scmp.lt.s32.totalorder (!%p479_p3), %s2148_s18, 1  ;;  %vm1480_vm15 = vcmask (!%p479_p3), 1043456  }
   0xb   : > { %2056 = vmatpush3.bf16.msra.mxu1 (!%p479_p3), %v2053_v7  ;;  %1910 = vmatprep.subr.mxu0 (!%p479_p3), %v598_v8  ;;  %v1786_v53 = vld [vmem:[%s2565_s4] ss:$0 sm:$0xff] (!%p479_p3) }
   0xc   : > { %1919 = vmatprep.subr.mxu1 (!%p479_p3), %v700_v10  ;;  %1921 = vmatprep.mubr.msk.f32.mxu1 (!%p479_p3), %vm606_vm0, %v594_v9  ;;  %v1791_v54 = vld [vmem:[%s2567_s6] ss:$0 sm:$0xff] (!%p479_p3) }
   0xd   : > { %v1796_v3 = vld [vmem:[%s2569_s8] ss:$0 sm:$0xff] (!%p479_p3) }
   0xe   : > { %s2582_s30 = smov (!%p551_p4, %s550_s30), 9  ;;  %1911 = vmatpush3.msra.mxu0 %v598_v8  ;;  %s2584_s18 = smov (!%p565_p5, %s2148_s18), 1 }
   0xf   : > { %s2298_s22 = sshll.u32 %s2582_s30, 3  ;;  %1920 = vmatpush3.msra.mxu1 %v700_v10  ;;  %1913 = vmatmul.mubr.msk.f32.vlgmr.msra.gmra.mrb[0].mxu0 %vm606_vm0, %v595_v13 }
  0x10   : > { %s2304_s25 = scalar_lea.vmem %s2561_s0, %s2298_s22  ;;  %1922 = vmatmul.mubr.msk.f32.vlgmr.msra.gmra.mrb[0].mxu1 %vm606_vm0, %v595_v13  ;;  %2058 = vmatprep.subr.bf16.mxu0 %v2057_v14  ;;  %s562_s17 = scalar_lea.vmem %s2563_s2, %s2298_s22 }
  0x11   : > { %v1017_v16 = vld [vmem:[%s2304_s25] sm:$0xff]  ;;  %2060 = vmatpush3.bf16.msra.mxu0 %v2057_v14  ;;  %1930 = vmatprep.mubr.msk.f32.mxu0 %vm606_vm0, %v594_v9  ;;  %v1018_v18 = vld [vmem:[%s2304_s25 + $0x8] sm:$0xff]  ;;  %v1020_v20 = vld [vmem:[%s2304_s25 + $0x18] sm:$0xff] }
  0x12   : > { %1928 = vmatprep.subr.mxu0 %v797_v15  ;;  %1058 = vperm.xlu1 %2116, %v1017_v16   ;;  %v1019_v21 = vld [vmem:[%s2304_s25 + $0x10] sm:$0xff]  ;;  %v1021_v22 = vld [vmem:[%s2304_s25 + $0x20] sm:$0xff]  ;;  %v899_v24 = vld [vmem:[%s562_s17 + $0x8] sm:$0xff]  ;;  %s2498_s25 = scalar_lea.vmem %s2576_s15, %s2298_s22  ;;  %s2515_s22 = sshll.u32 %s2584_s18, 4 }
  0x13   : > { %1025 = vperm.xlu0 %2115, %v1017_v16   ;;  %1933 = vmatprep.subr.mxu1 %v2160_v19  ;;  %v898_v23 = vld [vmem:[%s562_s17] sm:$0xff]  ;;  %v900_v25 = vld [vmem:[%s562_s17 + $0x10] sm:$0xff]  ;;  %v901_v26 = vld [vmem:[%s562_s17 + $0x18] sm:$0xff]  ;;  %s2521_s30 = scalar_lea.vmem %s2573_s12, %s2515_s22  ;;  %s574_s29 = scalar_lea.vmem %s2574_s13, %s2515_s22 }
  0x14   : > { %1934 = vmatpush3.msra.mxu1 %v903_v17  ;;  %1935 = vmatprep.mubr.msk.f32.mxu1 %vm2161_vm1, %v2160_v19  ;;  %v902_v27 = vld [vmem:[%s562_s17 + $0x20] sm:$0xff]  ;;  %891 = vst [vmem:[%s2521_s30 + $0x8] sm:$0xf] %v2160_v19  ;;  %893 = vst [vmem:[%s574_s29 + $0x8] sm:$0xf] %v2160_v19  ;;  %s579_s23 = scalar_lea.vmem %s2575_s14, %s2515_s22 }
  0x15   : > { %1929 = vmatpush3.msra.mxu0 %v797_v15  ;;  %1964 = vmatprep.subr.bf16.mxu1 %v2160_v19  ;;  %v1323_v14 = vld [vmem:[%s2572_s11] sm:$0xff]  ;;  %v1324_v15 = vld [vmem:[%s2572_s11 + $0x8] sm:$0xff]  ;;  %895 = vst.msk [vmem:[%s579_s23] sm:$0xff] %vm894_vm2, %v2160_v19 }
  0x16   : > { %1931 = vmatmul.mubr.msk.f32.vlgmr.msra.gmra.mrb[2].mxu0 %vm606_vm0, %v595_v13  ;;  %1061 = vperm.xlu1 %2116, %v1018_v18   ;;  %vm1476_vm0 = vcmask 326656  }
  0x17   : > { %1028 = vperm.xlu0 %2115, %v1018_v18   ;;  %1950 = vmatprep.subr.bf16.mxu0 %v2160_v19  ;;  %v2162_v18 = vmov 0.0|0.0  }
  0x18   : > { %1952 = vmatprep.mubr.msk.bf16.mxu0 %vm2161_vm1, %v2160_v19  ;;  %1936 = vmatmul.mubr.msk.f32.vlgmr.msra.gmra.mrb[2].mxu1 %vm894_vm2, %v898_v23  ;;  %v1326_v23 = vld [vmem:[%s2572_s11 + $0x18] sm:$0xff] }
  0x19   : > { %1938 = vmatprep.mubr.msk.f32.mxu1 %vm2161_vm1, %v2160_v19 }
  0x1a   : > { %2117 = vset.pattern.permute.xlu1 %v2159_v6 }
  0x1b   : > { %1034 = vperm.xlu1 %2117, %v1020_v20   ;;  %1031 = vperm.xlu0 %2115, %v1019_v21  }
  0x1c   : > { %1939 = vmatmul.mubr.msk.f32.gmra.mrb[4].mxu1 %vm894_vm2, %v899_v24 }
  0x1d   : > { %1941 = vmatprep.mubr.msk.f32.mxu1 %vm2161_vm1, %v2160_v19 }
  0x1f   : > { %2119 = vset.pattern.permute.xlu1 %v2158_v5  ;;  %2118 = vset.pattern.permute.xlu0 %v2158_v5 }
  0x20   : > { %1067 = vperm.xlu1 %2119, %v1020_v20   ;;  %1064 = vperm.xlu0 %2118, %v1019_v21   ;;  %v2062_v20 = vpack.c.bf16 %v1324_v15, %v1323_v14 }
  0x21   : > { %1942 = vmatmul.mubr.msk.f32.gmra.mrb[6].mxu1 %vm894_vm2, %v900_v25 }
  0x22   : > { %1944 = vmatprep.mubr.msk.f32.mxu1 %vm2161_vm1, %v2160_v19 }
  0x24   : > { %1070 = vperm.xlu0 %2118, %v1021_v22   ;;  %2120 = vset.pattern.permute.xlu1 %v2159_v6 }
  0x25   : > { %1037 = vperm.xlu1 %2120, %v1021_v22   ;;  %1945 = vmatmul.mubr.msk.f32.gmra.mrb[8].mxu1 %vm894_vm2, %v901_v26  ;;  %v1325_v22 = vld [vmem:[%s2572_s11 + $0x10] sm:$0xff] }
  0x26   : > { %1947 = vmatprep.mubr.msk.f32.mxu1 %vm2161_vm1, %v2160_v19  ;;  %v2065_v25 = vpack.c.bf16 %v1326_v23, %v1325_v22 }
  0x29   : > { %1948 = vmatmul.mubr.msk.f32.gmra.mrb[10].mxu1 %vm894_vm2, %v902_v27  ;;  %v1327_v27 = vld [vmem:[%s2572_s11 + $0x20] sm:$0xff] }
  0x2a   : > { %1966 = vmatprep.mubr.msk.bf16.mxu1 %vm2161_vm1, %v2160_v19 }
  0x91   : > { %v1059_v30 = vpop.permute.xlu1 %1058 }
  0x92   : > { %vm1072_vm3 = vcmp.eq.s32.totalorder %v2349_v29, %v1059_v30  ;;  %v1026_v31 = vpop.permute.xlu0 %1025 }
  0x93   : > { %vm1039_vm4 = vcmp.eq.s32.totalorder %v2349_v29, %v1026_v31  ;;  %v2354_v32 = vsel %vm1072_vm3, 1.0, %v2160_v19  ;;  %v2068_v31 = vpack.c.bf16 %v1328_v28, %v1327_v27 }
  0x94   : > { %v1807_v34 = vsel %vm1039_vm4, 1.0, %v2160_v19 }
  0x95   : > { %v1062_v33 = vpop.permute.xlu1 %1061 }
  0x96   : > { %vm1073_vm5 = vcmp.eq.s32.totalorder %v2349_v29, %v1062_v33  ;;  %v1029_v35 = vpop.permute.xlu0 %1028  ;;  %v1330_v33 = vld [vmem:[%s2572_s11 + $0x38] sm:$0xff] }
  0x97   : > { %v2359_v36 = vsel %vm1073_vm5, 1.0, %v2160_v19  ;;  %vm1040_vm6 = vcmp.eq.s32.totalorder %v2349_v29, %v1029_v35 }
  0x98   : > { %v1087_v37 = vpack.c.bf16 %v2359_v36, %v2354_v32  ;;  %v1808_v38 = vsel %vm1040_vm6, 1.0, %v2160_v19  ;;  %v1329_v32 = vld [vmem:[%s2572_s11 + $0x30] sm:$0xff]  ;;  %v1331_v36 = vld [vmem:[%s2572_s11 + $0x40] sm:$0xff] }
  0x99   : > { %v2365_v39 = vpack.c.bf16 %v1808_v38, %v1807_v34  ;;  %v2071_v34 = vpack.c.bf16 %v1330_v33, %v1329_v32 }
  0x9a   : > { %v1035_v40 = vpop.permute.xlu1 %1034  ;;  %v1032_v41 = vpop.permute.xlu0 %1031 }
  0x9b   : > { %vm1042_vm7 = vcmp.eq.s32.totalorder %v2349_v29, %v1035_v40  ;;  %vm1041_vm8 = vcmp.eq.s32.totalorder %v2349_v29, %v1032_v41  ;;  %1460 = vxpose.xlu1.c.b16.start [1/3] (short) (narrow) %v2365_v39, 16  ;;  %v1333_v40 = vld [vmem:[%s2572_s11 + $0x50] sm:$0xff]  ;;  %v1334_v41 = vld [vmem:[%s2572_s11 + $0x58] sm:$0xff] }
  0x9c   : > { %v1810_v42 = vsel %vm1042_vm7, 1.0, %v2160_v19  ;;  %v1809_v43 = vsel %vm1041_vm8, 1.0, %v2160_v19 }
  0x9d   : > { %v2372_v44 = vpack.c.bf16 %v1810_v42, %v1809_v43  ;;  %v2077_v42 = vpack.c.bf16 %v1334_v41, %v1333_v40  ;;  %v1335_v43 = vld [vmem:[%s2572_s11 + $0x60] sm:$0xff] }
  0x9f   : > { %v1068_v45 = vpop.permute.xlu1 %1067  ;;  %v1065_v46 = vpop.permute.xlu0 %1064  ;;  %1461 = vxpose.xlu1.c.b16.cont [2/3] (short) (narrow) %v2372_v44, 16 }
  0xa0   : > { %vm1075_vm9 = vcmp.eq.s32.totalorder %v2349_v29, %v1068_v45  ;;  %vm1074_vm10 = vcmp.eq.s32.totalorder %v2349_v29, %v1065_v46  ;;  %v1336_v45 = vld [vmem:[%s2572_s11 + $0x68] sm:$0xff] }
  0xa1   : > { %v2378_v47 = vsel %vm1075_vm9, 1.0, %v2160_v19  ;;  %v2381_v48 = vsel %vm1074_vm10, 1.0, %v2160_v19  ;;  %v2080_v46 = vpack.c.bf16 %v1336_v45, %v1335_v43 }
  0xa2   : > { %v1088_v49 = vpack.c.bf16 %v2378_v47, %v2381_v48 }
  0xa3   : > { %v1071_v30 = vpop.permute.xlu0 %1070 }
  0xa4   : > { %v1038_v50 = vpop.permute.xlu1 %1037  ;;  %vm1076_vm14 = vcmp.eq.s32.totalorder %v2349_v29, %v1071_v30 }
  0xa5   : > { %vm1043_vm11 = vcmp.eq.s32.totalorder %v2349_v29, %v1038_v50  ;;  %v1816_v35 = vsel %vm1076_vm14, 1.0, %v2160_v19 }
  0xa6   : > { %v1811_v51 = vsel %vm1043_vm11, 1.0, %v2160_v19  ;;  %v1089_v29 = vpack.c.bf16 %v1816_v35, %v1816_v35 }
  0xa7   : > { %v2387_v52 = vpack.c.bf16 %v1811_v51, %v1811_v51 }
  0xa9   : > { %1462 = vxpose.xlu1.c.b16.end [3/3] (short) (narrow) %v2387_v52, 16 }
  0xe2   : > { %v1914_v55 = vpop.f32.mrb[0].mxu0 }
  0xe3   : > { %v685_v56 = vadd.f32 %v1914_v55, %v1786_v53  ;;  %v1923_v57 = vpop.f32.mrb[0].mxu1  ;;  %v679_v58 = vpop.f32.mrb[1].mxu0 }
  0xe4   : > { %v780_v59 = vadd.f32 %v1923_v57, %v1791_v54  ;;  %v680_v60 = vadd.f32 %v1786_v53, %v679_v58  ;;  %v774_v61 = vpop.f32.mrb[1].mxu1 }
  0xe5   : > { %v1843_v62 = vpack.c.bf16 %v685_v56, %v685_v56  ;;  %v775_v63 = vadd.f32 %v1791_v54, %v774_v61 }
  0xe6   : > { %v784_v0 = vmul.f32 0.25, %v780_v59  ;;  %v1842_v1 = vpack.c.bf16 %v680_v60, %v680_v60  ;;  %v1801_v59 = vld [vmem:[%s2571_s10] ss:$0 sm:$0xff] }
  0xe7   : > { %697 = vst [vmem:[#allocation2 + $0x4] sm:$0x3] %v1843_v62  ;;  %v783_v2 = vmul.f32 0.25, %v775_v63 }
  0xe8   : > { %v1845_v4 = vpack.c.bf16 %v784_v0, %v784_v0  ;;  %696 = vst [vmem:[#allocation2] sm:$0xf] %v1842_v1 }
  0xe9   : > { %v1844_v5 = vpack.c.bf16 %v783_v2, %v783_v2  ;;  %v1932_v7 = vpop.f32.mrb[2].mxu0 }
  0xea   : > { %794 = vst [vmem:[#allocation3 + $0x4] sm:$0x3] %v1845_v4  ;;  %v877_v8 = vadd.f32 %v1932_v7, %v1796_v3  ;;  %v871_v9 = vpop.f32.mrb[3].mxu0 }
  0xeb   : > { %793 = vst [vmem:[#allocation3] sm:$0xf] %v1844_v5  ;;  %v872_v10 = vadd.f32 %v1796_v3, %v871_v9  ;;  %v993_v47 = vpop.f32.mrb[2].mxu1 }
  0xec   : > { %v1847_v11 = vpack.c.bf16 %v877_v8, %v877_v8  ;;  %v1937_v48 = vpop.f32.mrb[3].mxu1  ;;  %v994_v0 = vadd.f32 %v1801_v59, %v993_v47 }
  0xed   : > { %v1846_v12 = vpack.c.bf16 %v872_v10, %v872_v10 }
  0xee   : > { %889 = vst [vmem:[#allocation4 + $0x4] sm:$0x3] %v1847_v11 }
  0xef   : > { %v2121_v13 = vld [vmem:[#allocation2] sm:$0x3f]   ;;  %888 = vst [vmem:[#allocation4] sm:$0xf] %v1846_v12 }
  0xf0   : > { %v1184_v16 = vsel %vm1107_vm12, %v2121_v13, 0 }
  0xf1   : > { %1965 = vmatpush3.bf16.msra.mxu1 %v1184_v16 }
  0xf2   : > { %v2122_v17 = vld [vmem:[#allocation3] sm:$0x3f]   ;;  %2061 = vmatprep.subr.bf16.mxu1 %v2162_v18 }
  0xf3   : > { %v1109_v21 = vsel %vm1107_vm12, %v2122_v17, 0 }
  0xf4   : > { %1951 = vmatpush3.bf16.msra.mxu0 %v1109_v21  ;;  %1967 = vmatmul.mubr.msk.bf16.vlgmr.msra.gmra.mrb[12].mxu1 %vm1097_vm13, %v1087_v37  ;;  %v1332_v37 = vld [vmem:[%s2572_s11 + $0x48] sm:$0xff] }
  0xf5   : > { %1970 = vmatprep.mubr.msk.bf16.mxu1 %vm2161_vm1, %v2160_v19  ;;  %1978 = vmatprep.subr.bf16.mxu0 %v2160_v19  ;;  %v2074_v38 = vpack.c.bf16 %v1332_v37, %v1331_v36 }
  0xf6   : > { %v2123_v24 = vld [vmem:[#allocation4] sm:$0x3f]   ;;  %2063 = vmatpush3.bf16.msra.mxu1 %v2062_v20 }
  0xf7   : > { %1953 = vmatmul.mubr.msk.bf16.vlgmr.msra.gmra.mrb[4].mxu0 %vm1097_vm13, %v2365_v39  ;;  %v1250_v26 = vsel %vm1107_vm12, %v2123_v24, 0  ;;  %2064 = vmatprep.subr.bf16.mxu1 %v2162_v18 }
  0xf8   : > { %1956 = vmatprep.mubr.msk.bf16.mxu0 %vm2161_vm1, %v2160_v19  ;;  %1979 = vmatpush3.bf16.msra.mxu0 %v1250_v26 }
  0xfa   : > { %2066 = vmatpush3.bf16.msra.mxu1 %v2065_v25 }
  0xfb   : > { %2067 = vmatprep.subr.bf16.mxu1 %v2162_v18 }
  0xfc   : > { %1971 = vmatmul.mubr.msk.bf16.gmra.mrb[16].mxu1 %vm1097_vm13, %v1088_v49  ;;  %v998_v49 = vpop.f32.mrb[4].mxu1 }
  0xfd   : > { %1974 = vmatprep.mubr.msk.bf16.mxu1 %vm2161_vm1, %v2160_v19  ;;  %v1940_v50 = vpop.f32.mrb[5].mxu1  ;;  %v999_v4 = vadd.f32 %v1801_v59, %v998_v49 }
  0xfe   : > { %2069 = vmatpush3.bf16.msra.mxu1 %v2068_v31 }
  0xff   : > { %1957 = vmatmul.mubr.msk.bf16.gmra.mrb[8].mxu0 %vm1097_vm13, %v2372_v44  ;;  %2070 = vmatprep.subr.bf16.mxu1 %v2162_v18 }
 0x100   : > { %1960 = vmatprep.mubr.msk.bf16.mxu0 %vm2161_vm1, %v2160_v19 }
 0x102   : > { %2072 = vmatpush3.bf16.msra.mxu1 %v2071_v34 }
 0x103   : > { %2073 = vmatprep.subr.bf16.mxu1 %v2162_v18 }
 0x104   : > { %1975 = vmatmul.mubr.msk.bf16.gmra.mrb[20].mxu1 %vm1097_vm13, %v1089_v29 }
 0x105   : > { %2024 = vmatprep.mubr.msk.f32.mxu1 %vm2161_vm1, %v2160_v19 }
 0x106   : > { %2075 = vmatpush3.bf16.msra.mxu1 %v2074_v38 }
 0x107   : > { %1961 = vmatmul.mubr.msk.bf16.gmra.mrb[12].mxu0 %vm1097_vm13, %v2387_v52  ;;  %2076 = vmatprep.subr.bf16.mxu1 %v2162_v18 }
 0x108   : > { %1980 = vmatprep.mubr.msk.bf16.mxu0 %vm2161_vm1, %v2160_v19 }
 0x10a   : > { %2078 = vmatpush3.bf16.msra.mxu1 %v2077_v42 }
 0x10b   : > { %2079 = vmatprep.subr.bf16.mxu1 %v2162_v18 }
 0x10e   : > { %2081 = vmatpush3.bf16.msra.mxu1 %v2080_v46 }
 0x10f   : > { %1981 = vmatmul.mubr.msk.bf16.vlgmr.msra.gmra.mrb[16].mxu0 %vm1097_vm13, %v2365_v39  ;;  %2082 = vmatprep.subr.bf16.mxu1 %v2162_v18  ;;  %v1003_v39 = vpop.f32.mrb[6].mxu1 }
 0x110   : > { %1984 = vmatprep.mubr.msk.bf16.mxu0 %vm2161_vm1, %v2160_v19  ;;  %v1943_v51 = vpop.f32.mrb[7].mxu1  ;;  %v1004_v15 = vadd.f32 %v1801_v59, %v1003_v39 }
 0x111   : > { %v1008_v53 = vpop.f32.mrb[8].mxu1 }
 0x112   : > { %v1946_v54 = vpop.f32.mrb[9].mxu1  ;;  %v1009_v20 = vadd.f32 %v1801_v59, %v1008_v53 }
 0x113   : > { %v1013_v55 = vpop.f32.mrb[10].mxu1 }
 0x114   : > { %v1949_v56 = vpop.f32.mrb[11].mxu1  ;;  %v1014_v31 = vadd.f32 %v1801_v59, %v1013_v55 }
 0x117   : > { %1985 = vmatmul.mubr.msk.bf16.gmra.mrb[20].mxu0 %vm1097_vm13, %v2372_v44  ;;  %v1337_v44 = vld [vmem:[%s2572_s11 + $0x70] sm:$0xff] }
 0x118   : > { %1988 = vmatprep.mubr.msk.bf16.mxu0 %vm2161_vm1, %v2160_v19 }
 0x11f   : > { %1989 = vmatmul.mubr.msk.bf16.gmra.mrb[24].mxu0 %vm1097_vm13, %v2387_v52  ;;  %v1338_v52 = vld [vmem:[%s2572_s11 + $0x78] sm:$0xff] }
 0x120   : > { %1519 = vmatprep.mubr.bf16.mxu0 %v2159_v6  ;;  %v2083_v57 = vpack.c.bf16 %v1338_v52, %v1337_v44 }
 0x122   : > { %2084 = vmatpush3.bf16.msra.mxu1 %v2083_v57 }
 0x1c7   : > { %v1220_v58 = vpop.f32.mrb[12].mxu1 }
 0x1c8   : > { %v1968_v60 = vpop.f32.mrb[13].mxu1 }
 0x1c9   : > { %v1223_v61 = vpop.f32.mrb[14].mxu1 }
 0x1ca   : > { %v1145_v62 = vpop.f32.mrb[4].mxu0  ;;  %v1969_v63 = vpop.f32.mrb[15].mxu1 }
 0x1cb   : > { %v1308_v1 = vmul.f32 %v1220_v58, %v1145_v62  ;;  %v1954_v2 = vpop.f32.mrb[5].mxu0 }
 0x1cc   : > { %v1148_v3 = vpop.f32.mrb[6].mxu0 }
 0x1cd   : > { %v1313_v5 = vadd.f32 %v1308_v1, %v994_v0  ;;  %v1309_v7 = vmul.f32 %v1223_v61, %v1148_v3  ;;  %v1955_v8 = vpop.f32.mrb[7].mxu0 }
 0x1cf   : > { %1318 = vst [vmem:[%s2498_s25] sm:$0xff] %v1313_v5  ;;  %v1314_v9 = vadd.f32 %v1309_v7, %v999_v4  ;;  %2025 = vmatmul.mubr.f32.vlgmr.msra.gmra.mrb[24].mxu1 %v1313_v5  ;;  %v1228_v10 = vpop.f32.mrb[16].mxu1 }
 0x1d0   : > { %2027 = vmatprep.mubr.msk.f32.mxu1 %vm2161_vm1, %v2160_v19  ;;  %v1972_v11 = vpop.f32.mrb[17].mxu1 }
 0x1d1   : > { %1319 = vst [vmem:[%s2498_s25 + $0x8] sm:$0xff] %v1314_v9  ;;  %v1231_v12 = vpop.f32.mrb[18].mxu1 }
 0x1d2   : > { %v1153_v13 = vpop.f32.mrb[8].mxu0  ;;  %v1973_v14 = vpop.f32.mrb[19].mxu1 }
 0x1d3   : > { %v1310_v16 = vmul.f32 %v1228_v10, %v1153_v13  ;;  %v1958_v17 = vpop.f32.mrb[9].mxu0  ;;  %2028 = vmatmul.mubr.f32.gmra.mrb[26].mxu1 %v1314_v9 }
 0x1d4   : > { %v1156_v18 = vpop.f32.mrb[10].mxu0  ;;  %2030 = vmatprep.mubr.msk.f32.mxu1 %vm2161_vm1, %v2160_v19 }
 0x1d5   : > { %v1315_v21 = vadd.f32 %v1310_v16, %v1004_v15  ;;  %v1311_v22 = vmul.f32 %v1231_v12, %v1156_v18  ;;  %v1959_v23 = vpop.f32.mrb[11].mxu0 }
 0x1d6   : > { %v1468_v23 = vpop.trf.xlu1 }
 0x1d7   : > { %1320 = vst [vmem:[%s2498_s25 + $0x10] sm:$0xff] %v1315_v21  ;;  %v1316_v24 = vadd.f32 %v1311_v22, %v1009_v20  ;;  %2031 = vmatmul.mubr.f32.gmra.mrb[28].mxu1 %v1315_v21  ;;  %v1236_v25 = vpop.f32.mrb[20].mxu1 }
 0x1d8   : > { %v1976_v26 = vpop.f32.mrb[21].mxu1  ;;  %2033 = vmatprep.mubr.msk.f32.mxu1 %vm2161_vm1, %v2160_v19 }
 0x1d9   : > { %1321 = vst [vmem:[%s2498_s25 + $0x18] sm:$0xff] %v1316_v24  ;;  %v1239_v27 = vpop.f32.mrb[22].mxu1  ;;  %v1531_v26 = vld [vmem:[%s2521_s30 + $0x8] sm:$0xf] }
 0x1da   : > { %v1161_v28 = vpop.f32.mrb[12].mxu0  ;;  %v1977_v30 = vpop.f32.mrb[23].mxu1 }
 0x1db   : > { %v1312_v32 = vmul.f32 %v1236_v25, %v1161_v28  ;;  %2034 = vmatmul.mubr.f32.gmra.mrb[30].mxu1 %v1316_v24  ;;  %v1962_v33 = vpop.f32.mrb[13].mxu0  ;;  %v2163_v24 = vmov 1065369472   ;;  %v1545_v25 = vsel %vm1480_vm15, 1065369472, %v2159_v6 }
 0x1dc   : > { %2036 = vmatprep.mubr.msk.f32.mxu1 %vm2161_vm1, %v2160_v19  ;;  %v1164_v34 = vpop.f32.mrb[14].mxu0  ;;  %v1537_v28 = vld [vmem:[%s574_s29 + $0x8] sm:$0xf] }
 0x1dd   : > { %v1317_v35 = vadd.f32 %v1312_v32, %v1014_v31  ;;  %v1963_v36 = vpop.f32.mrb[15].mxu0  ;;  %v1542_v34 = vld [vmem:[%s579_s23] sm:$0xff] }
 0x1df   : > { %1322 = vst [vmem:[%s2498_s25 + $0x20] sm:$0xff] %v1317_v35  ;;  %2037 = vmatmul.mubr.f32.gmra.mrb[32].mxu1 %v1317_v35 }
 0x1e2   : > { %v1286_v37 = vpop.f32.mrb[16].mxu0 }
 0x1e3   : > { %v1982_v29 = vpop.f32.mrb[17].mxu0 }
 0x1e4   : > { %v1289_v38 = vpop.f32.mrb[18].mxu0 }
 0x1e5   : > { %v1983_v40 = vpop.f32.mrb[19].mxu0 }
 0x1ea   : > { %v1294_v41 = vpop.f32.mrb[20].mxu0 }
 0x1eb   : > { %v1986_v42 = vpop.f32.mrb[21].mxu0 }
 0x1ec   : > { %v1297_v43 = vpop.f32.mrb[22].mxu0 }
 0x1ed   : > { %v1987_v45 = vpop.f32.mrb[23].mxu0 }
 0x1f2   : > { %v1302_v46 = vpop.f32.mrb[24].mxu0 }
 0x1f3   : > { %v1990_v47 = vpop.f32.mrb[25].mxu0 }
 0x1f4   : > { %v1305_v48 = vpop.f32.mrb[26].mxu0 }
 0x1f5   : > { %v1991_v49 = vpop.f32.mrb[27].mxu0 }
 0x2a2   : > { %v1405_v50 = vpop.f32.mrb[24].mxu1 }
 0x2a3   : > { %v1829_v39 = vclamps-f32 %v1405_v50, 5.0  ;;  %v2026_v51 = vpop.f32.mrb[25].mxu1 }
 0x2a5   : > { %v1439_v53 = vmul.f32 1.442695, %v1829_v39 }
 0x2a6   : > { %v1410_v54 = vpop.f32.mrb[26].mxu1 }
 0x2a7   : > { %2124 = vpow2.f32 %v1439_v53  ;;  %v1830_v55 = vclamps-f32 %v1410_v54, 5.0  ;;  %v2029_v56 = vpop.f32.mrb[27].mxu1 }
 0x2a9   : > { %v1441_v44 = vmul.f32 1.442695, %v1830_v55 }
 0x2aa   : > { %v1415_v52 = vpop.f32.mrb[28].mxu1 }
 0x2ab   : > { %2126 = vpow2.f32 %v1441_v44  ;;  %v1831_v57 = vclamps-f32 %v1415_v52, 5.0  ;;  %v2032_v58 = vpop.f32.mrb[29].mxu1 }
 0x2ad   : > { %v1443_v59 = vmul.f32 1.442695, %v1831_v57 }
 0x2ae   : > { %v1420_v60 = vpop.f32.mrb[30].mxu1 }
 0x2af   : > { %2128 = vpow2.f32 %v1443_v59  ;;  %v1832_v61 = vclamps-f32 %v1420_v60, 5.0  ;;  %v2035_v62 = vpop.f32.mrb[31].mxu1 }
 0x2b1   : > { %v2125_v63 = vpop.eup %2124  ;;  %v1445_v0 = vmul.f32 1.442695, %v1832_v61 }
 0x2b2   : > { %v1425_v1 = vpop.f32.mrb[32].mxu1  ;;  %v1449_v2 = vmul.f32 %v2125_v63, %v1286_v37 }
 0x2b3   : > { %2130 = vpow2.f32 %v1445_v0  ;;  %v1833_v3 = vclamps-f32 %v1425_v1, 5.0  ;;  %v2038_v4 = vpop.f32.mrb[33].mxu1 }
 0x2b5   : > { %v2127_v5 = vpop.eup %2126  ;;  %v1447_v7 = vmul.f32 1.442695, %v1833_v3 }
 0x2b6   : > { %v1455_v8 = vpack.c.bf16 %v2127_v5, %v2125_v63  ;;  %v1450_v9 = vmul.f32 %v2127_v5, %v1289_v38 }
 0x2b7   : > { %2132 = vpow2.f32 %v1447_v7 }
 0x2b8   : > { %1487 = vmatprep.subr.bf16.mxu0 %v1455_v8  ;;  %v1454_v10 = vpack.c.bf16 %v1450_v9, %v1449_v2 }
 0x2b9   : > { %v2129_v11 = vpop.eup %2128 }
 0x2ba   : > { %1488 = vmatpush1.bf16.msra.mxu0 %v1454_v10  ;;  %v1451_v12 = vmul.f32 %v2129_v11, %v1294_v41 }
 0x2bd   : > { %v2131_v13 = vpop.eup %2130 }
 0x2be   : > { %v1457_v14 = vpack.c.bf16 %v2131_v13, %v2129_v11  ;;  %v1452_v15 = vmul.f32 %v2131_v13, %v1297_v43 }
 0x2c0   : > { %1489 = vmatprep.subr.bf16.mxu0 %v1457_v14  ;;  %v1456_v16 = vpack.c.bf16 %v1452_v15, %v1451_v12 }
 0x2c1   : > { %v2133_v17 = vpop.eup %2132 }
 0x2c2   : > { %1490 = vmatpush1.bf16.msra.mxu0 %v1456_v16  ;;  %v1459_v18 = vpack.c.bf16 %v2133_v17, %v2133_v17  ;;  %v1453_v20 = vmul.f32 %v2133_v17, %v1302_v46 }
 0x2c4   : > { %1834 = vmatprep.subr.msk.bf16.mxu0 %vm1480_vm15, %v1459_v18  ;;  %v1458_v21 = vpack.c.bf16 %v1453_v20, %v1453_v20 }
 0x2c6   : > { %v1482_v22 = vsel %vm1480_vm15, %v1458_v21, 0 }
 0x2c7   : > { %1492 = vmatpush1.bf16.msra.mxu0 %v1482_v22 }
 0x2c8   : > { %2039 = vmatprep.subr.bf16.mxu0 %v2160_v19 }
 0x2ca   : > { %1835 = vmatmul.mubr.msk.bf16.vlgmr.msra.gmra.mrb[28].mxu0 %vm1476_vm0, %v1468_v23 }
 0x2cb   : > { %2040 = vmatpush3.bf16.msra.mxu0 %v2163_v24  ;;  %2045 = vmatprep.mubr.msk.bf16.mxu0 %vm2161_vm1, %v2160_v19  ;;  %vm896_vm1 = vcmask 60416  }
 0x2cc   : > { %2041 = vmatprep.subr.bf16.mxu0 %v2160_v19  ;;  %897 = vst.msk [vmem:[%s579_s23 + $0x8] sm:$0xf] %vm896_vm1, %v2160_v19 }
 0x2cf   : > { %2042 = vmatpush3.bf16.msra.mxu0 %v2163_v24 }
 0x2d0   : > { %2043 = vmatprep.subr.bf16.mxu0 %v2160_v19 }
 0x2d3   : > { %2044 = vmatpush3.bf16.msra.mxu0 %v1545_v25  ;;  %v1543_v36 = vld [vmem:[%s579_s23 + $0x8] sm:$0xf] }
 0x2d6   : > { %2046 = vmatmul.mubr.msk.bf16.vlgmr.msra.gmra.mrb[32].mxu0 %vm1476_vm0, %v1468_v23 }
 0x39d   : > { %v1521_v6 = vpop.f32.mrb[28].mxu0 }
 0x39e   : > { %v1523_v27 = vpop.f32.mrb[29].mxu0  ;;  %1534 = vst [vmem:[%s2521_s30] sm:$0xff] %v1521_v6 }
 0x39f   : > { %v1525_v30 = vpop.f32.mrb[30].mxu0  ;;  %1540 = vst [vmem:[%s574_s29] sm:$0xff] %v1523_v27 }
 0x3a0   : > { %v1533_v31 = vadd.f32 %v1531_v26, %v1525_v30  ;;  %v1527_v32 = vpop.f32.mrb[31].mxu0 }
 0x3a1   : > { %v1539_v33 = vadd.f32 %v1537_v28, %v1527_v32 }
 0x3a2   : > { %1535 = vst [vmem:[%s2521_s30 + $0x8] sm:$0xf] %v1533_v31 }
 0x3a3   : > { %1541 = vst [vmem:[%s574_s29 + $0x8] sm:$0xf] %v1539_v33 }
 0x3a9   : > { %v1581_v35 = vpop.f32.mrb[32].mxu0 }
 0x3aa   : > { %v1588_v37 = vadd.f32 %v1581_v35, %v1542_v34  ;;  %v2047_v29 = vpop.f32.mrb[33].mxu0 }
 0x3ab   : > { %v1584_v38 = vpop.f32.mrb[34].mxu0 }
 0x3ac   : > { %1590 = vst.msk [vmem:[%s579_s23] sm:$0xff] %vm894_vm2, %v1588_v37  ;;  %v1589_v19 = vadd.f32 %v1584_v38, %v1543_v36  ;;  %v2048_v40 = vpop.f32.mrb[35].mxu0 }
 0x3ae   : > { %1592 = vst.msk [vmem:[%s579_s23 + $0x8] sm:$0xf] %vm896_vm1, %v1589_v19 }
 0x3af PF: > { %s26_s20 = sadd.s32 1, %s2156_s20   ;;  %s2577_s18 = smov %s2152_s19 }
 0x3b0   : > { %p23_p6 = scmp.ge.s32.totalorder %s26_s20, 4   ;;  %s2578_s19 = smov %s2580_s21 }
 0x3b2   :  { %25 = sbr.rel (!%p23_p6) target bundleno = 2 (0x2), region = 141 }

</bundles_post_ra>
